<compile_context>
chip_gen: v7x
topology: tpu7x:2x2x1
jax: 0.10.0
libtpu: 0.0.40
codegen_flags: <defaults>
</compile_context>

<pallas_src>
import numpy as np
import jax
import jax.numpy as jnp
from jax.experimental import pallas as pl
from jax.experimental.pallas import tpu as pltpu


def _round_up(x: int, m: int) -> int:
    return ((x + m - 1) // m) * m


def _pick_rows(rows_total: int, batch: int) -> int:
    """Sublane rows per output tile.

    Multiple of 8 (or the full extent), ~<=2048 frames per tile, dividing the
    padded row count where possible, and giving >= 2 grid steps when B == 1 so
    v7x's second TensorCore has work.
    """
    if rows_total <= 8:
        return rows_total                      # single full-extent tile
    if rows_total <= 16:
        return 8 if batch == 1 else rows_total
    return 16 if rows_total % 16 == 0 else 8


def _length_regulator_kernel(padding_value: int):
    def kernel(cum_ref, mel_ref):
        # cum_ref: (B, S) int32 cumulative (rounded, masked) durations in SMEM
        #          (scalar prefetch).
        # mel_ref: (ROWS, 128) int32 output tile (leading batch dim squeezed).
        S = cum_ref.shape[1]
        ROWS, LANES = mel_ref.shape
        b = pl.program_id(0)
        t0 = pl.program_id(1) * (ROWS * LANES)

        # Loop-invariant frame position within the tile (t0 lives on scalars).
        pos = (jax.lax.broadcasted_iota(jnp.int32, (ROWS, LANES), 0) * LANES
               + jax.lax.broadcasted_iota(jnp.int32, (ROWS, LANES), 1))

        total_t = cum_ref[b, S - 1] - t0                       # scalar

        # mel[b, t] = #{s : cum[b, s] <= t} + 1 for t < total[b]
        def body(s, acc):
            c = cum_ref[b, s] - t0                             # scalar SMEM read
            return acc + (pos >= c).astype(jnp.int32)

        unroll = True if S <= 32 else 8
        cnt = jax.lax.fori_loop(0, S, body,
                                jnp.zeros((ROWS, LANES), jnp.int32),
                                unroll=unroll)

        mel_ref[...] = jnp.where(pos < total_t, cnt + 1, jnp.int32(padding_value))

    return kernel


def length_regulator(duration, padding_mask=None, rate_ratio: float = 1.0,
                     padding_value: int = 0):
    """Returns (mel_duration (B, T) int32, dur_cum_sum (B, S) int32)."""
    assert rate_ratio > 0.0
    duration = jnp.asarray(duration, jnp.float32)
    B, S = duration.shape
    if padding_mask is None:
        mask = jnp.ones((B, S), jnp.int32)
    else:
        mask = jnp.asarray(padding_mask).astype(jnp.int32)

    # Rounded, masked integer durations + cumulative sum (hoisted to the wrapper).
    dur_i = jnp.round(duration * jnp.float32(rate_ratio)).astype(jnp.int32) * mask
    cum = jnp.cumsum(dur_i, axis=1)                      # (B, S) int32 -> dur_cum_sum

    # Data-dependent output length (one device->host sync; mirrors torch .cpu()).
    T = int(jax.device_get(jnp.max(cum[:, -1])))
    # TODO(synk): torch would return a (B, 0) tensor when all durations round to 0.
    T = max(T, 1)

    # Output re-layout: (B, rows, 128) so the mel-frame axis is sublane+lane dense.
    T_pad = _round_up(T, 128)
    rows_total = max(T_pad // 128, 1)
    ROWS = _pick_rows(rows_total, B)
    rows_pad = _round_up(rows_total, ROWS)

    mel3 = pl.pallas_call(
        _length_regulator_kernel(int(padding_value)),
        grid_spec=pltpu.PrefetchScalarGridSpec(
            num_scalar_prefetch=1,                      # cum -> SMEM
            grid=(B, rows_pad // ROWS),
            in_specs=[],
            out_specs=pl.BlockSpec((None, ROWS, 128),
                                   lambda b, rt, cum_s: (b, rt, 0)),
        ),
        out_shape=jax.ShapeDtypeStruct((B, rows_pad, 128), jnp.int32),
        compiler_params=pltpu.CompilerParams(
            dimension_semantics=("parallel", "parallel")),
    )(cum)

    mel = mel3.reshape(B, rows_pad * 128)[:, :T]
    return mel, cum


def _reference(duration, padding_mask, rate_ratio, padding_value=0):
    dur = np.round(np.asarray(duration, np.float32) * np.float32(rate_ratio)).astype(np.int64)
    if padding_mask is not None:
        dur = dur * np.asarray(padding_mask, np.int64)
    B, S = dur.shape
    cum = np.cumsum(dur, axis=1)
    prev = cum - dur
    T = max(int(dur.sum(-1).max()), 1)
    pos = np.arange(T)[None, None, :]
    tok = np.arange(1, S + 1)[None, :, None]
    m = (pos >= prev[:, :, None]) & (pos < cum[:, :, None])
    mel = (tok * m.astype(np.int64)).sum(1)
    if padding_value != 0:
        mel[mel == 0] = padding_value
    return mel, cum


if __name__ == "__main__":
    key = jax.random.PRNGKey(0)

    # Case 1: small, single T tile, padding_value = 0.
    B, S = 2, 8
    kd, km, kd2, km2 = jax.random.split(key, 4)
    duration = jax.random.randint(kd, (B, S), 1, 5).astype(jnp.float32)
    padding_mask = (jax.random.uniform(km, (B, S)) > 0.2).astype(jnp.int32)
    padding_mask = padding_mask.at[:, :4].set(1)  # keep some tokens valid
    rate_ratio = 1.5

    mel, cum = length_regulator(duration, padding_mask, rate_ratio, padding_value=0)
    jax.block_until_ready(mel)
    jax.block_until_ready(cum)
    ref_mel, ref_cum = _reference(np.asarray(duration), np.asarray(padding_mask), rate_ratio, 0)
    assert np.array_equal(np.asarray(mel, np.int64), ref_mel), (mel, ref_mel)
    assert np.array_equal(np.asarray(cum, np.int64), ref_cum), (cum, ref_cum)

    # Case 2: longer durations -> multi-row output tile, nonzero padding_value.
    B2, S2 = 2, 16
    duration2 = jax.random.randint(kd2, (B2, S2), 10, 40).astype(jnp.float32)
    padding_mask2 = (jax.random.uniform(km2, (B2, S2)) > 0.3).astype(jnp.int32)
    padding_mask2 = padding_mask2.at[:, :8].set(1)
    rate_ratio2 = 1.0

    mel2, cum2 = length_regulator(duration2, padding_mask2, rate_ratio2, padding_value=-1)
    jax.block_until_ready(mel2)
    jax.block_until_ready(cum2)
    ref_mel2, ref_cum2 = _reference(np.asarray(duration2), np.asarray(padding_mask2),
                                    rate_ratio2, -1)
    assert np.array_equal(np.asarray(mel2, np.int64), ref_mel2), (mel2, ref_mel2)
    assert np.array_equal(np.asarray(cum2, np.int64), ref_cum2), (cum2, ref_cum2)

    print("KERNEL_OK")
</pallas_src>

<mosaic_0001>
module attributes {stable_mosaic.version = 11 : i64} {
  func.func @kernel(%arg0: i32, %arg1: i32, %arg2: memref<2x8xi32, #tpu.memory_space<smem>>, %arg3: memref<1x1x128xi32, #tpu.memory_space<vmem>>) attributes {dimension_semantics = [#tpu.dimension_semantics<parallel>, #tpu.dimension_semantics<parallel>], iteration_bounds = array<i64: 2, 1>, scalar_prefetch = 1 : i64, scratch_operands = 0 : i64, tpu.core_type = #tpu.core_type<tc>, window_params = [{transform_indices = @transform_0, window_bounds = array<i64: 1, 1, 128>}]} {
    %c128_i32 = arith.constant 128 : i32
    %0 = arith.muli %arg1, %c128_i32 : i32
    %1 = tpu.iota {dimensions = array<i32: 0>} : vector<1x128xi32>
    %c128_i32_0 = arith.constant 128 : i32
    %2 = vector.broadcast %c128_i32_0 : i32 to vector<1x128xi32>
    %3 = arith.muli %1, %2 : vector<1x128xi32>
    %4 = tpu.iota {dimensions = array<i32: 1>} : vector<1x128xi32>
    %5 = arith.addi %3, %4 : vector<1x128xi32>
    %6 = arith.index_cast %arg0 : i32 to index
    %c7 = arith.constant 7 : index
    %7 = memref.load %arg2[%6, %c7] : memref<2x8xi32, #tpu.memory_space<smem>>
    %8 = arith.subi %7, %0 : i32
    %c0_i32 = arith.constant 0 : i32
    %9 = vector.broadcast %c0_i32 : i32 to vector<1x128xi32>
    %c0_i32_1 = arith.constant 0 : i32
    %10 = arith.index_cast %arg0 : i32 to index
    %11 = arith.index_cast %c0_i32_1 : i32 to index
    %12 = memref.load %arg2[%10, %11] : memref<2x8xi32, #tpu.memory_space<smem>>
    %13 = arith.subi %12, %0 : i32
    %14 = vector.broadcast %13 : i32 to vector<1x128xi32>
    %15 = arith.cmpi sge, %5, %14 : vector<1x128xi32>
    %16 = arith.extui %15 : vector<1x128xi1> to vector<1x128xi32>
    %17 = arith.addi %9, %16 : vector<1x128xi32>
    %c1_i32 = arith.constant 1 : i32
    %18 = arith.index_cast %arg0 : i32 to index
    %19 = arith.index_cast %c1_i32 : i32 to index
    %20 = memref.load %arg2[%18, %19] : memref<2x8xi32, #tpu.memory_space<smem>>
    %21 = arith.subi %20, %0 : i32
    %22 = vector.broadcast %21 : i32 to vector<1x128xi32>
    %23 = arith.cmpi sge, %5, %22 : vector<1x128xi32>
    %24 = arith.extui %23 : vector<1x128xi1> to vector<1x128xi32>
    %25 = arith.addi %17, %24 : vector<1x128xi32>
    %c2_i32 = arith.constant 2 : i32
    %26 = arith.index_cast %arg0 : i32 to index
    %27 = arith.index_cast %c2_i32 : i32 to index
    %28 = memref.load %arg2[%26, %27] : memref<2x8xi32, #tpu.memory_space<smem>>
    %29 = arith.subi %28, %0 : i32
    %30 = vector.broadcast %29 : i32 to vector<1x128xi32>
    %31 = arith.cmpi sge, %5, %30 : vector<1x128xi32>
    %32 = arith.extui %31 : vector<1x128xi1> to vector<1x128xi32>
    %33 = arith.addi %25, %32 : vector<1x128xi32>
    %c3_i32 = arith.constant 3 : i32
    %34 = arith.index_cast %arg0 : i32 to index
    %35 = arith.index_cast %c3_i32 : i32 to index
    %36 = memref.load %arg2[%34, %35] : memref<2x8xi32, #tpu.memory_space<smem>>
    %37 = arith.subi %36, %0 : i32
    %38 = vector.broadcast %37 : i32 to vector<1x128xi32>
    %39 = arith.cmpi sge, %5, %38 : vector<1x128xi32>
    %40 = arith.extui %39 : vector<1x128xi1> to vector<1x128xi32>
    %41 = arith.addi %33, %40 : vector<1x128xi32>
    %c4_i32 = arith.constant 4 : i32
    %42 = arith.index_cast %arg0 : i32 to index
    %43 = arith.index_cast %c4_i32 : i32 to index
    %44 = memref.load %arg2[%42, %43] : memref<2x8xi32, #tpu.memory_space<smem>>
    %45 = arith.subi %44, %0 : i32
    %46 = vector.broadcast %45 : i32 to vector<1x128xi32>
    %47 = arith.cmpi sge, %5, %46 : vector<1x128xi32>
    %48 = arith.extui %47 : vector<1x128xi1> to vector<1x128xi32>
    %49 = arith.addi %41, %48 : vector<1x128xi32>
    %c5_i32 = arith.constant 5 : i32
    %50 = arith.index_cast %arg0 : i32 to index
    %51 = arith.index_cast %c5_i32 : i32 to index
    %52 = memref.load %arg2[%50, %51] : memref<2x8xi32, #tpu.memory_space<smem>>
    %53 = arith.subi %52, %0 : i32
    %54 = vector.broadcast %53 : i32 to vector<1x128xi32>
    %55 = arith.cmpi sge, %5, %54 : vector<1x128xi32>
    %56 = arith.extui %55 : vector<1x128xi1> to vector<1x128xi32>
    %57 = arith.addi %49, %56 : vector<1x128xi32>
    %c6_i32 = arith.constant 6 : i32
    %58 = arith.index_cast %arg0 : i32 to index
    %59 = arith.index_cast %c6_i32 : i32 to index
    %60 = memref.load %arg2[%58, %59] : memref<2x8xi32, #tpu.memory_space<smem>>
    %61 = arith.subi %60, %0 : i32
    %62 = vector.broadcast %61 : i32 to vector<1x128xi32>
    %63 = arith.cmpi sge, %5, %62 : vector<1x128xi32>
    %64 = arith.extui %63 : vector<1x128xi1> to vector<1x128xi32>
    %65 = arith.addi %57, %64 : vector<1x128xi32>
    %c7_i32 = arith.constant 7 : i32
    %66 = arith.index_cast %arg0 : i32 to index
    %67 = arith.index_cast %c7_i32 : i32 to index
    %68 = memref.load %arg2[%66, %67] : memref<2x8xi32, #tpu.memory_space<smem>>
    %69 = arith.subi %68, %0 : i32
    %70 = vector.broadcast %69 : i32 to vector<1x128xi32>
    %71 = arith.cmpi sge, %5, %70 : vector<1x128xi32>
    %72 = arith.extui %71 : vector<1x128xi1> to vector<1x128xi32>
    %73 = arith.addi %65, %72 : vector<1x128xi32>
    %c8_i32 = arith.constant 8 : i32
    %74 = vector.broadcast %8 : i32 to vector<1x128xi32>
    %75 = arith.cmpi slt, %5, %74 : vector<1x128xi32>
    %c1_i32_2 = arith.constant 1 : i32
    %76 = vector.broadcast %c1_i32_2 : i32 to vector<1x128xi32>
    %77 = arith.addi %73, %76 : vector<1x128xi32>
    %c0_i32_3 = arith.constant 0 : i32
    %78 = vector.broadcast %c0_i32_3 : i32 to vector<1x128xi32>
    %79 = arith.select %75, %77, %78 : vector<1x128xi1>, vector<1x128xi32>
    %c0 = arith.constant 0 : index
    %c0_4 = arith.constant 0 : index
    %c0_5 = arith.constant 0 : index
    %80 = vector.load %arg3[%c0, %c0_4, %c0_5] : memref<1x1x128xi32, #tpu.memory_space<vmem>>, vector<1x1x128xi32>
    %81 = vector.shape_cast %80 : vector<1x1x128xi32> to vector<1x128xi32>
    %82 = vector.shape_cast %79 : vector<1x128xi32> to vector<1x1x128xi32>
    tpu.vector_store %arg3[%c0, %c0_4, %c0_5], %82 {strides = array<i32>} : memref<1x1x128xi32, #tpu.memory_space<vmem>>, vector<1x1x128xi32>,
    return
  }
  func.func @transform_0(%arg0: i32, %arg1: i32, %arg2: memref<2x8xi32, #tpu.memory_space<smem>>) -> (i32, i32, i32) {
    %c0_i32 = arith.constant 0 : i32
    %c0_i32_0 = arith.constant 0 : i32
    return %arg0, %arg1, %c0_i32 : i32, i32, i32
  }
}

</mosaic_0001>

<bundles_post_ra>
// kernel: tpu_custom_call.1
= control target key start
LH: loop header
LB: loop body
LE: loop exit
PB: predicated region body
PF: predicated region fallthrough
CT: control target
= control target key end

     0   :  { %s426_s0 = inlined_call_operand.hbm [shape: s32[2,8], index: 0, kind: input, shape index: {}]   ;;  %s427_s1 = inlined_call_operand.hbm [shape: s32[2,1,128], index: 1, kind: output, shape index: {}]  }
   0x1   :  { %s233_s8 = scalar_lea.hbm %s426_s0, 32 }
   0x2   :  { %p234_p0 = scmp.ne.s32.totalorder %s426_s0, %s233_s8  ;;  %p237_p1 = scmp.lt.u32.totalorder %s233_s8, %s426_s0 }
   0x4   :  { %p239_p2 = pnand %p237_p1, %p234_p0 }
   0x6   :  { %242 = shalt.err (!%p239_p2)  }
   0x7   :  { %s309_s13 = smov [#allocation3]  }
   0x8   :  { %7 = dma.hbm_to_smem %s426_s0, 32, %s309_s13, [#allocation2] }
   0x9   :  { %287 = dma.done.wait [#allocation2], 32 }
   0xa   :  { %288 = vsyncadd [#allocation2], 4294967264 }
   0xb   :  { %9 = sfence }
   0xc   :  { %10 = vsyncpa [#allocation5], 0 }
   0xd   :  { %12 = vsyncpa [#allocation5 + $0x1], 0  ;;  %s334_s16 = smov 0   ;;  %s336_s17 = smov 0  }
   0xe   :  { %s338_s18 = smov 0   ;;  %s340_s19 = smov 0  }
   0xf LB: > { %s27_s0 = sadd.s32 1, %s303_s18  ;;  %s185_s20 = sadd.s32 4294967295, %s307_s19   ;;  %s307_s19 = sphi %s340_s19, %s18_s19   ;;  %s303_s18 = sphi %s338_s18, %s432_s18   ;;  %s299_s17 = sphi %s336_s17, %s431_s17   ;;  %s295_s16 = sphi %s334_s16, %s430_s16  }
  0x10   : > { %p29_p3 = scmp.ge.s32.totalorder %s27_s0, 2  ;;  %p45_p4 = scmp.ne.s32.totalorder %s299_s17, %s295_s16 }
  0x11   : > { %s36_s21 = sadd.s32 1, %s299_s17  ;;  %p46_p5 = scmp.eq.s32.totalorder %s185_s20, 1 }
  0x12   : > { %s434_s0 = smov (%p29_p3, %s27_s0), 0  ;;  %p40_p6 = scmp.eq.s32.totalorder %s307_s19, 1 }
  0x13   : > { %s31_s22 = ssub.s32 %s303_s18, %s434_s0  ;;  %p364_p9 = por %p46_p5, %p45_p4 }
  0x14   : > { %p34_p7 = scmp.eq.s32.totalorder %s31_s22, 0  ;;  %p186_p8 = scmp.ne.s32.totalorder %s31_s22, 0 }
  0x15   : > { %p187_p11 = scmp.ge.s32.totalorder %s307_s19, 2 }
  0x16   : > { %s369_s24 = scalar_select %p34_p7, %s299_s17, %s36_s21  }
  0x17   : > { %p371_p10 = por %p186_p8, %p40_p6  ;;  %55 = sbr.rel (%p187_p11) target bundleno = 67 (0x43), region = 12  ;;  %v63_v0 = vlaneseq (!%p187_p11)  ;;  %v310_v6 = vmov (!%p187_p11), 0  }
  0x18   : > { %s188_s26 = sshll.u32 (!%p187_p11), %s303_s18, 7  ;;  %s60_s13 = sand.u32 (!%p187_p11), 1, %s299_s17  }
  0x19   : > { %s70_s27 = sadd.s32 (!%p187_p11), 7, %s188_s26  ;;  %v64_v1 = vshrl.u32 (!%p187_p11), %v63_v0, 7  ;;  %v67_v2 = vand.u32 (!%p187_p11), 127, %v63_v0  ;;  %s73_s29 = sld [smem:[#allocation3 + %s188_s26]] (!%p187_p11) }
  0x1a   : > { %s377_s28 = sld [smem:[#allocation3 + %s70_s27]] (!%p187_p11)  ;;  %s78_s30 = sadd.s32 (!%p187_p11), 1, %s188_s26 }
  0x1b   : > { %s85_s2 = sadd.s32 (!%p187_p11), 2, %s188_s26  ;;  %v65_v3 = vmul.u32 (!%p187_p11), 128, %v64_v1  ;;  %s79_s3 = sld [smem:[#allocation3 + %s78_s30]] (!%p187_p11) }
  0x1c   : > { %s86_s4 = sld [smem:[#allocation3 + %s85_s2]] (!%p187_p11)  ;;  %s92_s5 = sadd.s32 (!%p187_p11), 3, %s188_s26 }
  0x1d   : > { %s99_s6 = sadd.s32 (!%p187_p11), 4, %s188_s26  ;;  %v68_v4 = vadd.s32 (!%p187_p11), %v67_v2, %v65_v3  ;;  %s93_s7 = sld [smem:[#allocation3 + %s92_s5]] (!%p187_p11) }
  0x1e   : > { %s100_s8 = sld [smem:[#allocation3 + %s99_s6]]  ;;  %s106_s9 = sadd.s32 5, %s188_s26 }
  0x1f   : > { %s113_s10 = sadd.s32 6, %s188_s26  ;;  %v75_v5 = vstv %s73_s29  ;;  %s107_s11 = sld [smem:[#allocation3 + %s106_s9]] }
  0x20   : > { %s114_s12 = sld [smem:[#allocation3 + %s113_s10]]  ;;  %vm76_vm0 = vcmp.ge.s32.totalorder %v68_v4, %v75_v5  ;;  %v120_v20 = vstv %s377_s28  ;;  %s61_s14 = scalar_lea.vmem [#allocation4], %s60_s13 }
  0x21   : > { %v77_v7 = vsel %vm76_vm0, 1, %v310_v6  ;;  %v81_v8 = vstv %s79_s3  ;;  %vm121_vm7 = vcmp.ge.s32.totalorder %v68_v4, %v120_v20  ;;  %s142_s15 = sshll.u32 %s61_s14, 4  ;;  %s189_s20 = sshll.u32 %s303_s18, 4  ;;  %vm124_vm8 = vcmp.lt.s32.totalorder %v68_v4, %v120_v20  ;;  %s382_s15 = int_to_ptr.vmem [resolvable:$true] %s142_s15 }
  0x22   : > { %v88_v9 = vstv %s86_s4  ;;  %vm82_vm1 = vcmp.ge.s32.totalorder %v68_v4, %v81_v8  ;;  %v122_v26 = vsel %vm121_vm7, 1, %v310_v6  ;;  %s387_s26 = scalar_lea.hbm %s427_s1, %s189_s20  ;;  %s129_s27 = scalar_lea.sflag [#allocation5], %s60_s13 }
  0x23   : > { %vm89_vm2 = vcmp.ge.s32.totalorder %v68_v4, %v88_v9  ;;  %v83_v10 = vsel %vm82_vm1, 1, %v310_v6  ;;  %v95_v12 = vstv %s93_s7  ;;  %s243_s28 = scalar_lea.vmem %s382_s15, 16  ;;  %s311_s18 = smov [#allocation4]  }
  0x24   : > { %v90_v11 = vsel %vm89_vm2, 1, %v310_v6  ;;  %v102_v13 = vstv %s100_s8  ;;  %v84_v14 = vadd.s32 %v83_v10, %v77_v7  ;;  %vm96_vm3 = vcmp.ge.s32.totalorder %v68_v4, %v95_v12  ;;  %p244_p12 = scmp.ne.s32.totalorder %s382_s15, %s243_s28  ;;  %s247_s29 = sshll.u32 %s311_s18, 4  ;;  %s248_s29 = int_to_ptr.vmem [resolvable:$false] %s247_s29 }
  0x25   : > { %vm103_vm4 = vcmp.ge.s32.totalorder %v68_v4, %v102_v13  ;;  %v97_v15 = vsel %vm96_vm3, 1, %v310_v6  ;;  %v109_v16 = vstv %s107_s11  ;;  %s249_s30 = scalar_lea.vmem %s248_s29, 32  ;;  %p250_p1 = scmp.lt.s32.totalorder %s382_s15, %s248_s29 }
  0x26   : > { %v116_v17 = vstv %s114_s12  ;;  %v91_v18 = vadd.s32 %v90_v11, %v84_v14  ;;  %vm110_vm5 = vcmp.ge.s32.totalorder %v68_v4, %v109_v16  ;;  %v104_v19 = vsel %vm103_vm4, 1, %v310_v6  ;;  %p245_p13 = pnand %p244_p12, %p371_p10  ;;  %p251_p2 = scmp.lt.s32.totalorder %s249_s30, %s243_s28 }
  0x27   : > { %vm117_vm6 = vcmp.ge.s32.totalorder %v68_v4, %v116_v17  ;;  %v111_v22 = vsel %vm110_vm5, 1, %v310_v6 }
  0x28   : > { %v98_v21 = vadd.s32 %v97_v15, %v91_v18  ;;  %v118_v24 = vsel %vm117_vm6, 1, %v310_v6  ;;  %p246_p0 = pneg %p245_p13  ;;  %p252_p3 = por %p251_p2, %p250_p1 }
  0x2a   : > { %v105_v23 = vadd.s32 %v104_v19, %v98_v21  ;;  %p253_p4 = pnand %p252_p3, %p246_p0 }
  0x2c   : > { %v112_v25 = vadd.s32 %v111_v22, %v105_v23 }
  0x2e   : > { %v119_v27 = vadd.s32 %v118_v24, %v112_v25 }
  0x30   : > { %v123_v28 = vadd.s32 %v122_v26, %v119_v27 }
  0x32   : > { %v125_v29 = vadd.s32 1, %v123_v28 }
  0x34   : > { %v126_v30 = vsel %vm124_vm8, %v125_v29, 0 }
  0x35   : > { %127 = vst [vmem:[%s61_s14] sm:$0x1] %v126_v30 }
  0x36   : > { %256 = shalt.err (!%p253_p4)
}
  0x37   : > { %s257_s2 = scalar_lea.hbm %s387_s26, 16  ;;  %s261_s5 = scalar_lea.hbm %s427_s1, 32 }
  0x38   : > { %p258_p5 = scmp.ne.s32.totalorder %s387_s26, %s257_s2  ;;  %p262_p8 = scmp.lt.u32.totalorder %s387_s26, %s427_s1 }
  0x39   : > { %p263_p11 = scmp.lt.u32.totalorder %s261_s5, %s257_s2  ;;  %p265_p13 = scmp.lt.u32.totalorder %s257_s2, %s387_s26 }
  0x3a   : > { %p259_p6 = pnand %p258_p5, %p371_p10 }
  0x3b   : > { %p264_p12 = por %p263_p11, %p262_p8 }
  0x3c   : > { %p260_p7 = pneg %p259_p6 }
  0x3d   : > { %p266_p0 = por %p265_p13, %p264_p12 }
  0x3f   : > { %p267_p1 = pnand %p266_p0, %p260_p7 }
  0x41   : > { %270 = shalt.err (!%p267_p1)
}
  0x42   : > { %192 = dma.vmem_to_hbm [thread:$0]  (%p371_p10), %s382_s15, 16, %s387_s26, %s129_s27  }
  0x43 PF: > { %p198_p2 = scmp.ge.s32.totalorder %s307_s19, 1  ;;  %s154_s8 = sand.u32 1, %s295_s16  }
  0x44   : > { %s155_s9 = scalar_lea.sflag [#allocation5], %s154_s8 }
  0x45   : > { %p195_p3 = pnand %p198_p2, %p364_p9 }
  0x47   : > { %290 = dma.done.wait (!%p195_p3), %s155_s9, 16  }
  0x48   : > { %292 = vsyncadd (!%p195_p3), %s155_s9, 4294967280  ;;  %s18_s19 = sadd.s32 1, %s307_s19   ;;  %s430_s16 = smov %s299_s17 }
  0x49   : > { %p15_p4 = scmp.ge.s32.totalorder %s18_s19, 3   ;;  %s431_s17 = smov %s369_s24 }
  0x4a   : > { %s432_s18 = smov %s434_s0 }
  0x4b   :  { %17 = sbr.rel (!%p15_p4) target bundleno = 15 (0xf), region = 44 }
  0x52   :  { %159 = vsyncpa [#allocation5], 1 }
  0x53   :  { %161 = vsyncpa [#allocation5 + $0x1], 1 }

</bundles_post_ra>
